<compile_context>
chip_gen: v7x
topology: tpu7x:2x2x1
jax: 0.10.0
libtpu: 0.0.40
codegen_flags: <defaults>
</compile_context>

<pallas_src>
import jax
import jax.numpy as jnp
from jax import lax
from jax.experimental import pallas as pl
from jax.experimental.pallas import tpu as pltpu

_MIB = 1024 * 1024


def _vmem_limit(nbytes, lo=32 * _MIB, hi=100 * _MIB):
    return int(min(hi, max(lo, nbytes)))


# ---------------------------------------------------------------------------
# Kernel 1: input projection  gx = x @ [W_ih_f | W_ih_b] + (b_ih + b_hh)
#           one big MXU GEMM, bf16 operands, f32 accumulation, bf16 output.
# ---------------------------------------------------------------------------
def _input_proj_kernel(x_ref, w_ref, b_ref, o_ref):
    acc = jnp.dot(x_ref[...].astype(jnp.bfloat16), w_ref[...],
                  preferred_element_type=jnp.float32)
    o_ref[...] = (acc + b_ref[...]).astype(o_ref.dtype)


def _input_projection(x2, w_cat, b_cat, *, row_block=512, col_block=1024):
    """x2: (M, I) f32, w_cat: (I, 8H) bf16, b_cat: (1, 8H) f32 -> (M, 8H) bf16."""
    M, I = x2.shape
    G2 = w_cat.shape[1]
    tm = M if M <= row_block else row_block
    tn = G2 if G2 <= col_block else col_block
    grid = (pl.cdiv(M, tm), pl.cdiv(G2, tn))
    vmem = _vmem_limit(2 * 2 * (tm * I * x2.dtype.itemsize
                                + I * tn * 2 + tn * 4 + tm * tn * 2))
    return pl.pallas_call(
        _input_proj_kernel,
        out_shape=jax.ShapeDtypeStruct((M, G2), jnp.bfloat16),
        grid_spec=pltpu.PrefetchScalarGridSpec(
            num_scalar_prefetch=0,
            grid=grid,
            in_specs=[
                pl.BlockSpec((tm, I), lambda i, j: (i, 0)),
                pl.BlockSpec((I, tn), lambda i, j: (0, j)),
                pl.BlockSpec((1, tn), lambda i, j: (0, j)),
            ],
            out_specs=pl.BlockSpec((tm, tn), lambda i, j: (i, j)),
        ),
        compiler_params=pltpu.CompilerParams(
            dimension_semantics=("parallel", "parallel"),
            vmem_limit_bytes=vmem),
    )(x2, w_cat, b_cat)


# ---------------------------------------------------------------------------
# Kernel 2: bidirectional recurrence over blocks of TB time steps.
# ---------------------------------------------------------------------------
def _make_recurrent_kernel(T, TB, NT, needs_mask, unroll):
    def kernel(gxf_ref, gxb_ref, whh_f_ref, whh_b_ref,
               outf_ref, outb_ref, hf, cf, hb, cb):
        n = pl.program_id(0)
        H = hf.shape[-1]

        @pl.when(n == 0)
        def _():
            hf[...] = jnp.zeros_like(hf)
            cf[...] = jnp.zeros_like(cf)
            hb[...] = jnp.zeros_like(hb)
            cb[...] = jnp.zeros_like(cb)

        w_f = whh_f_ref[...]          # bf16 (H, 4H)
        w_b = whh_b_ref[...]

        def sigmoid(x):
            # Single EUP op on the critical path: sigmoid(x) = 0.5*(tanh(x/2)+1).
            return 0.5 * (jnp.tanh(0.5 * x) + 1.0)

        def cell(gx, w_hh, h_ref, c_ref, valid=None):
            # PyTorch LSTM gate order: i, f, g, o.  gx already holds x@W_ih + biases.
            gates = (gx.astype(jnp.float32)
                     + jnp.dot(h_ref[...].astype(jnp.bfloat16), w_hh,
                               preferred_element_type=jnp.float32))
            i = sigmoid(gates[:, 0 * H:1 * H])
            f = sigmoid(gates[:, 1 * H:2 * H])
            g = jnp.tanh(gates[:, 2 * H:3 * H])
            o = sigmoid(gates[:, 3 * H:4 * H])
            c = f * c_ref[...] + i * g
            h = o * jnp.tanh(c)
            if valid is not None:
                # Padded (global t >= T) steps: keep the carry untouched so the
                # backward direction starts its real work from (h, c) = 0.
                c = jnp.where(valid, c, c_ref[...])
                h = jnp.where(valid, h, h_ref[...])
            c_ref[...] = c
            h_ref[...] = h
            return h

        def step(s, carry):
            # Forward direction: local time s within this block.
            h_f = cell(gxf_ref[s], w_f, hf, cf)
            outf_ref[s] = h_f.astype(outf_ref.dtype)
            # Backward direction: block index map already reverses block order;
            # walk local time in reverse so global time goes Tp-1 ... 0.
            sb = TB - 1 - s
            valid = None
            if needs_mask:
                valid = ((NT - 1 - n) * TB + sb) < T
            h_b = cell(gxb_ref[sb], w_b, hb, cb, valid)
            outb_ref[sb] = h_b.astype(outb_ref.dtype)
            return carry

        lax.fori_loop(0, TB, step, 0, unroll=unroll)

    return kernel


# ---------------------------------------------------------------------------
# Public wrapper: x (B, T, I) batch_first -> out (B, T, H) = fwd + bwd
# ---------------------------------------------------------------------------
def blstm_forward(x, params, *, time_block=16, unroll=True):
    B, T, I = x.shape
    H = params["w_hh_f"].shape[0]            # w_hh stored as (H, 4H) bf16
    G = 4 * H

    TB = max(1, min(time_block, T))
    NT = pl.cdiv(T, TB)
    Tp = NT * TB

    # --- 1) time-major input; pad time on the small I-wide array ------------
    x_tm = jnp.transpose(x, (1, 0, 2))                       # (T, B, I)
    if Tp != T:
        x_tm = jnp.pad(x_tm, ((0, Tp - T), (0, 0), (0, 0)))
    gx8 = _input_projection(x_tm.reshape(Tp * B, I),
                            params["w_ih_cat"], params["b_cat"])  # (Tp*B, 8H) bf16
    gx8 = gx8.reshape(Tp, B, 2 * G)                          # free reshape

    # --- 2) fwd / bwd gate streams: same array, different last-dim block ----
    if G % 128 == 0:
        gx_f_arr, gx_b_arr, bwd_lastblk = gx8, gx8, 1        # zero-copy views
    else:
        gx_f_arr, gx_b_arr, bwd_lastblk = gx8[..., :G], gx8[..., G:], 0

    needs_mask = Tp != T
    kernel = _make_recurrent_kernel(T, TB, NT, needs_mask, unroll)

    out_bytes = jnp.dtype(x.dtype).itemsize
    vmem = _vmem_limit(2 * (2 * 2 * (TB * B * G * 2 + TB * B * H * out_bytes)
                            + 2 * 2 * H * G * 2 + 4 * B * H * 4))

    grid_spec = pltpu.PrefetchScalarGridSpec(
        num_scalar_prefetch=0,
        grid=(NT,),
        in_specs=[
            pl.BlockSpec((TB, B, G), lambda n: (n, 0, 0)),                 # fwd gates
            pl.BlockSpec((TB, B, G), lambda n: (NT - 1 - n, 0, bwd_lastblk)),  # bwd gates
            pl.BlockSpec((H, G), lambda n: (0, 0)),                        # W_hh fwd
            pl.BlockSpec((H, G), lambda n: (0, 0)),                        # W_hh bwd
        ],
        out_specs=[
            pl.BlockSpec((TB, B, H), lambda n: (n, 0, 0)),                 # fwd h
            pl.BlockSpec((TB, B, H), lambda n: (NT - 1 - n, 0, 0)),        # bwd h
        ],
        scratch_shapes=[pltpu.VMEM((B, H), jnp.float32)] * 4,              # hf cf hb cb
    )
    out_f, out_b = pl.pallas_call(
        kernel,
        grid_spec=grid_spec,
        out_shape=(jax.ShapeDtypeStruct((Tp, B, H), x.dtype),
                   jax.ShapeDtypeStruct((Tp, B, H), x.dtype)),
        compiler_params=pltpu.CompilerParams(
            dimension_semantics=("arbitrary",),          # sequential recurrence
            vmem_limit_bytes=vmem),
    )(gx_f_arr, gx_b_arr, params["w_hh_f"], params["w_hh_b"])

    # --- 3) fwd + bwd sum, unpad, back to batch_first (trivial XLA epilogue) -
    out = (out_f + out_b)[:T]
    return jnp.transpose(out, (1, 0, 2))


# ---------------------------------------------------------------------------
# Parameter init (PyTorch nn.LSTM layout + kernel-ready layout)
# ---------------------------------------------------------------------------
def init_params(key, input_size, hidden_size):
    H = hidden_size
    bound = 1.0 / jnp.sqrt(jnp.float32(H))
    keys = jax.random.split(key, 8)
    u = lambda kk, shape: jax.random.uniform(kk, shape, jnp.float32, -bound, bound)

    w_ih_f = u(keys[0], (4 * H, input_size))
    w_hh_f = u(keys[1], (4 * H, H))
    b_ih_f = u(keys[2], (4 * H,))
    b_hh_f = u(keys[3], (4 * H,))
    w_ih_b = u(keys[4], (4 * H, input_size))
    w_hh_b = u(keys[5], (4 * H, H))
    b_ih_b = u(keys[6], (4 * H,))
    b_hh_b = u(keys[7], (4 * H,))

    torch_params = dict(
        w_ih_f=w_ih_f, w_hh_f=w_hh_f, b_ih_f=b_ih_f, b_hh_f=b_hh_f,
        w_ih_b=w_ih_b, w_hh_b=w_hh_b, b_ih_b=b_ih_b, b_hh_b=b_hh_b,
    )
    # Kernel layout: W_ih of both directions pre-concatenated (I, 8H) bf16,
    # biases (b_ih + b_hh) fused and concatenated (1, 8H) f32, W_hh as (H, 4H) bf16.
    kernel_params = dict(
        w_ih_cat=jnp.concatenate([w_ih_f.T, w_ih_b.T], axis=1).astype(jnp.bfloat16),
        b_cat=jnp.concatenate([b_ih_f + b_hh_f, b_ih_b + b_hh_b])[None, :],
        w_hh_f=w_hh_f.T.astype(jnp.bfloat16),
        w_hh_b=w_hh_b.T.astype(jnp.bfloat16),
    )
    return torch_params, kernel_params


# ---------------------------------------------------------------------------
# Pure-JAX f32 reference matching torch.nn.LSTM (one direction)
# ---------------------------------------------------------------------------
def _lstm_dir_ref(x, w_ih, w_hh, b_ih, b_hh, reverse):
    B, T, I = x.shape
    H = w_hh.shape[1]

    def cell(carry, xt):
        h, c = carry
        gates = xt @ w_ih.T + h @ w_hh.T + b_ih + b_hh
        i, f, g, o = jnp.split(gates, 4, axis=-1)
        c = jax.nn.sigmoid(f) * c + jax.nn.sigmoid(i) * jnp.tanh(g)
        h = jax.nn.sigmoid(o) * jnp.tanh(c)
        return (h, c), h

    xs = jnp.swapaxes(x, 0, 1)
    if reverse:
        xs = xs[::-1]
    _, hs = jax.lax.scan(cell, (jnp.zeros((B, H)), jnp.zeros((B, H))), xs)
    if reverse:
        hs = hs[::-1]
    return jnp.swapaxes(hs, 0, 1)


if __name__ == "__main__":
    # Small but non-trivial shapes: B multiple of 8, 4H = 128 (lane aligned),
    # T NOT a multiple of the time block to exercise padding + reversed blocks
    # + the in-kernel backward-carry mask.
    B, T, I, H = 8, 13, 16, 32
    key = jax.random.PRNGKey(0)
    kx, kp = jax.random.split(key)
    x = jax.random.normal(kx, (B, T, I), jnp.float32)
    torch_p, kernel_p = init_params(kp, I, H)

    out = jax.block_until_ready(blstm_forward(x, kernel_p, time_block=8))

    ref = (_lstm_dir_ref(x, torch_p["w_ih_f"], torch_p["w_hh_f"],
                         torch_p["b_ih_f"], torch_p["b_hh_f"], reverse=False)
           + _lstm_dir_ref(x, torch_p["w_ih_b"], torch_p["w_hh_b"],
                           torch_p["b_ih_b"], torch_p["b_hh_b"], reverse=True))

    assert out.shape == (B, T, H), out.shape
    # bf16 matmul operands + bf16 gx storage -> loosened tolerance vs f32 reference.
    err = float(jnp.max(jnp.abs(out - ref)))
    assert err < 3e-2, err
    print("KERNEL_OK")
</pallas_src>

<mosaic_0001>
module attributes {stable_mosaic.version = 11 : i64} {
  func.func @_input_proj_kernel(%arg0: i32, %arg1: i32, %arg2: memref<128x16xf32, #tpu.memory_space<vmem>>, %arg3: memref<16x256xbf16, #tpu.memory_space<vmem>>, %arg4: memref<1x256xf32, #tpu.memory_space<vmem>>, %arg5: memref<128x256xbf16, #tpu.memory_space<vmem>>) attributes {dimension_semantics = [#tpu.dimension_semantics<parallel>, #tpu.dimension_semantics<parallel>], iteration_bounds = array<i64: 1, 1>, scalar_prefetch = 0 : i64, scratch_operands = 0 : i64, tpu.core_type = #tpu.core_type<tc>, window_params = [{transform_indices = @transform_0, window_bounds = array<i64: 128, 16>}, {transform_indices = @transform_1, window_bounds = array<i64: 16, 256>}, {transform_indices = @transform_2, window_bounds = array<i64: 1, 256>}, {transform_indices = @transform_3, window_bounds = array<i64: 128, 256>}]} {
    %c0 = arith.constant 0 : index
    %c0_0 = arith.constant 0 : index
    %0 = vector.load %arg2[%c0, %c0_0] : memref<128x16xf32, #tpu.memory_space<vmem>>, vector<128x16xf32>
    %1 = arith.truncf %0 : vector<128x16xf32> to vector<128x16xbf16>
    %c0_1 = arith.constant 0 : index
    %c0_2 = arith.constant 0 : index
    %2 = vector.load %arg3[%c0_1, %c0_2] : memref<16x256xbf16, #tpu.memory_space<vmem>>, vector<16x256xbf16>
    %cst = arith.constant dense<0.000000e+00> : vector<128x256xf32>
    %3 = tpu.matmul %1, %2, %cst {dimension_numbers = #tpu.dot_dimension_numbers<[1], [0], [0], [1], [0, 0, 1, 1], [], []>} : vector<128x16xbf16>, vector<16x256xbf16>, vector<128x256xf32> -> vector<128x256xf32>
    %c0_3 = arith.constant 0 : index
    %c0_4 = arith.constant 0 : index
    %4 = vector.load %arg4[%c0_3, %c0_4] : memref<1x256xf32, #tpu.memory_space<vmem>>, vector<1x256xf32>
    %5 = vector.broadcast %4 : vector<1x256xf32> to vector<128x256xf32>
    %6 = arith.addf %3, %5 : vector<128x256xf32>
    %7 = arith.truncf %6 : vector<128x256xf32> to vector<128x256xbf16>
    %c0_5 = arith.constant 0 : index
    %c0_6 = arith.constant 0 : index
    %8 = vector.load %arg5[%c0_5, %c0_6] : memref<128x256xbf16, #tpu.memory_space<vmem>>, vector<128x256xbf16>
    tpu.vector_store %arg5[%c0_5, %c0_6], %7 {strides = array<i32>} : memref<128x256xbf16, #tpu.memory_space<vmem>>, vector<128x256xbf16>,
    return
  }
  func.func @transform_0(%arg0: i32, %arg1: i32) -> (i32, i32) {
    %c0_i32 = arith.constant 0 : i32
    %c0_i32_0 = arith.constant 0 : i32
    return %arg0, %c0_i32 : i32, i32
  }
  func.func @transform_1(%arg0: i32, %arg1: i32) -> (i32, i32) {
    %c0_i32 = arith.constant 0 : i32
    %c0_i32_0 = arith.constant 0 : i32
    return %c0_i32, %arg1 : i32, i32
  }
  func.func @transform_2(%arg0: i32, %arg1: i32) -> (i32, i32) {
    %c0_i32 = arith.constant 0 : i32
    %c0_i32_0 = arith.constant 0 : i32
    return %c0_i32, %arg1 : i32, i32
  }
  func.func @transform_3(%arg0: i32, %arg1: i32) -> (i32, i32) {
    %c0_i32 = arith.constant 0 : i32
    return %arg0, %arg1 : i32, i32
  }
}

</mosaic_0001>

<bundles_post_ra>
// kernel: tpu_custom_call.1
= control target key start
LH: loop header
LB: loop body
LE: loop exit
PB: predicated region body
PF: predicated region fallthrough
CT: control target
= control target key end

     0   :  { %v405_v2 = vmov 0   ;;  %vm64_vm0 = vcmask 130048   ;;  %s542_s0 = inlined_call_operand.vmem [shape: f32[128,16], index: 0, kind: input, shape index: {}]   ;;  %s543_s1 = inlined_call_operand.vmem [shape: bf16[16,256], index: 1, kind: input, shape index: {}]   ;;  %s544_s2 = inlined_call_operand.vmem [shape: f32[1,256], index: 2, kind: input, shape index: {}]   ;;  %s545_s3 = inlined_call_operand.hbm [shape: bf16[128,256], index: 3, kind: output, shape index: {}]  }
   0x1   :  { %v378_v0 = vld [vmem:[%s543_s1 + $0x4] ss:$8 sps:$4 sm:$0xff]   ;;  %v380_v1 = vld [vmem:[%s543_s1] ss:$8 sps:$4 sm:$0xff]   ;;  %121 = vmatprep.mubr.bf16.mxu0 %v405_v2  ;;  %161 = vmatprep.mubr.bf16.mxu1 %v405_v2  ;;  %v18_v9 = vld [vmem:[%s542_s0 + $0x10] sm:$0xff] }
   0x2   :  { %v16_v3 = vld [vmem:[%s542_s0] sm:$0xff]  ;;  %v17_v4 = vld [vmem:[%s542_s0 + $0x8] sm:$0xff]  ;;  %89 = vmatprep.subr.bf16.mxu0 %v378_v0  ;;  %372 = vmatprep.subr.bf16.mxu1 %v378_v0  ;;  %v19_v10 = vld [vmem:[%s542_s0 + $0x18] sm:$0xff] }
   0x3   :  { %v32_v5 = vpack.c.bf16 %v17_v4, %v16_v3  ;;  %v24_v6 = vld [vmem:[%s542_s0 + $0x40] sm:$0xff]  ;;  %v25_v7 = vld [vmem:[%s542_s0 + $0x48] sm:$0xff]  ;;  %90 = vmatpush1.bf16.msra.mxu0 %v380_v1  ;;  %373 = vmatpush1.bf16.msra.mxu1 %v380_v1  ;;  %v26_v11 = vld [vmem:[%s542_s0 + $0x50] sm:$0xff] }
   0x4   :  { %v36_v8 = vpack.c.bf16 %v25_v7, %v24_v6  ;;  %v27_v12 = vld [vmem:[%s542_s0 + $0x58] sm:$0xff] }
   0x6   :  { %332 = vmatmul.mubr.msk.bf16.vlgmr.msra.gmra.mrb[0].mxu0 %vm64_vm0, %v32_v5  ;;  %336 = vmatmul.mubr.msk.bf16.vlgmr.msra.gmra.mrb[0].mxu1 %vm64_vm0, %v36_v8 }
   0x7   :  { %131 = vmatprep.mubr.bf16.mxu0 %v405_v2  ;;  %171 = vmatprep.mubr.bf16.mxu1 %v405_v2 }
   0x8   :  { %8 = vsyncpa [#allocation3], 0  ;;  %v33_v13 = vpack.c.bf16 %v19_v10, %v18_v9  ;;  %v37_v14 = vpack.c.bf16 %v27_v12, %v26_v11  ;;  %v20_v15 = vld [vmem:[%s542_s0 + $0x20] sm:$0xff]  ;;  %v21_v16 = vld [vmem:[%s542_s0 + $0x28] sm:$0xff]  ;;  %v44_v27 = vlaneseq }
   0x9   :  { %v28_v17 = vld [vmem:[%s542_s0 + $0x60] sm:$0xff]  ;;  %v29_v18 = vld [vmem:[%s542_s0 + $0x68] sm:$0xff]  ;;  %v34_v19 = vpack.c.bf16 %v21_v16, %v20_v15  ;;  %v22_v21 = vld [vmem:[%s542_s0 + $0x30] sm:$0xff] }
   0xa   :  { %v38_v20 = vpack.c.bf16 %v29_v18, %v28_v17  ;;  %v23_v22 = vld [vmem:[%s542_s0 + $0x38] sm:$0xff]  ;;  %v30_v23 = vld [vmem:[%s542_s0 + $0x70] sm:$0xff]  ;;  %v45_v28 = vshrl.u32 %v44_v27, 7  ;;  %v42_v30 = vld [vmem:[%s544_s2] sm:$0x3] }
   0xb   :  { %v31_v24 = vld [vmem:[%s542_s0 + $0x78] sm:$0xff]  ;;  %v35_v25 = vpack.c.bf16 %v23_v22, %v22_v21  ;;  %s406_s0 = smov [#allocation2]  }
   0xc   :  { %v39_v26 = vpack.c.bf16 %v31_v24, %v30_v23  ;;  %v46_v29 = vsub.s32 0, %v45_v28  ;;  %v50_v31 = vsub.s32 1, %v45_v28  ;;  %s319_s2 = sshll.u32 %s406_s0, 4  ;;  %s320_s2 = int_to_ptr.vmem [resolvable:$true] %s319_s2 }
   0xd   :  { %s381_s22 = scalar_lea.vmem %s320_s2, 2048  ;;  %p386_p1 = scmp.lt.s32.totalorder %s320_s2, %s320_s2 }
   0xe   :  { %333 = vmatmul.mubr.msk.bf16.gmra.mrb[4].mxu0 %vm64_vm0, %v33_v13  ;;  %337 = vmatmul.mubr.msk.bf16.gmra.mrb[4].mxu1 %vm64_vm0, %v37_v14  ;;  %v494_v32 = vrot.slane %v42_v30, %v46_v29  ;;  %v496_v33 = vrot.slane %v42_v30, %v50_v31  ;;  %p382_p0 = scmp.ne.s32.totalorder %s320_s2, %s381_s22  ;;  %p387_p2 = scmp.lt.s32.totalorder %s381_s22, %s381_s22 }
   0xf   :  { %141 = vmatprep.mubr.bf16.mxu0 %v405_v2  ;;  %181 = vmatprep.mubr.bf16.mxu1 %v405_v2 }
  0x10   :  { %p388_p3 = por %p387_p2, %p386_p1 }
  0x12   :  { %p389_p4 = pnand %p388_p3, %p382_p0 }
  0x16   :  { %334 = vmatmul.mubr.msk.bf16.gmra.mrb[8].mxu0 %vm64_vm0, %v34_v19  ;;  %338 = vmatmul.mubr.msk.bf16.gmra.mrb[8].mxu1 %vm64_vm0, %v38_v20 }
  0x17   :  { %151 = vmatprep.mubr.bf16.mxu0 %v405_v2  ;;  %191 = vmatprep.mubr.bf16.mxu1 %v405_v2 }
  0x1e   :  { %335 = vmatmul.mubr.msk.bf16.gmra.mrb[12].mxu0 %vm64_vm0, %v35_v25  ;;  %339 = vmatmul.mubr.msk.bf16.gmra.mrb[12].mxu1 %vm64_vm0, %v39_v26 }
  0xd9   :  { %v123_v34 = vpop.f32.mrb[0].mxu0  ;;  %v163_v35 = vpop.f32.mrb[0].mxu1 }
  0xda   :  { %v124_v36 = vadd.f32 %v123_v34, %v494_v32  ;;  %v164_v37 = vadd.f32 %v163_v35, %v494_v32  ;;  %v125_v38 = vpop.f32.mrb[1].mxu0  ;;  %v165_v39 = vpop.f32.mrb[1].mxu1 }
  0xdb   :  { %v126_v40 = vadd.f32 %v125_v38, %v496_v33  ;;  %v166_v41 = vadd.f32 %v165_v39, %v496_v33  ;;  %v127_v42 = vpop.f32.mrb[2].mxu0  ;;  %v167_v43 = vpop.f32.mrb[2].mxu1 }
  0xdc   :  { %v128_v44 = vadd.f32 %v127_v42, %v494_v32  ;;  %v168_v45 = vadd.f32 %v167_v43, %v494_v32  ;;  %v129_v46 = vpop.f32.mrb[3].mxu0  ;;  %v169_v47 = vpop.f32.mrb[3].mxu1 }
  0xdd   :  { %v356_v48 = vpack.c.bf16 %v126_v40, %v124_v36  ;;  %v364_v49 = vpack.c.bf16 %v166_v41, %v164_v37  ;;  %v130_v50 = vadd.f32 %v129_v46, %v496_v33  ;;  %v170_v51 = vadd.f32 %v169_v47, %v496_v33 }
  0xdf   :  { %298 = vst [vmem:[#allocation2] sm:$0xff] %v356_v48  ;;  %306 = vst [vmem:[#allocation2 + $0x40] sm:$0xff] %v364_v49  ;;  %v357_v52 = vpack.c.bf16 %v130_v50, %v128_v44  ;;  %v365_v53 = vpack.c.bf16 %v170_v51, %v168_v45 }
  0xe1   :  { %299 = vst [vmem:[#allocation2 + $0x8] sm:$0xff] %v357_v52  ;;  %307 = vst [vmem:[#allocation2 + $0x48] sm:$0xff] %v365_v53  ;;  %v133_v54 = vpop.f32.mrb[4].mxu0  ;;  %v173_v55 = vpop.f32.mrb[4].mxu1 }
  0xe2   :  { %v134_v56 = vadd.f32 %v133_v54, %v494_v32  ;;  %v174_v57 = vadd.f32 %v173_v55, %v494_v32  ;;  %v135_v58 = vpop.f32.mrb[5].mxu0  ;;  %v175_v59 = vpop.f32.mrb[5].mxu1 }
  0xe3   :  { %v136_v60 = vadd.f32 %v135_v58, %v496_v33  ;;  %v176_v61 = vadd.f32 %v175_v59, %v496_v33  ;;  %v137_v62 = vpop.f32.mrb[6].mxu0  ;;  %v177_v63 = vpop.f32.mrb[6].mxu1 }
  0xe4   :  { %v138_v0 = vadd.f32 %v137_v62, %v494_v32  ;;  %v178_v1 = vadd.f32 %v177_v63, %v494_v32  ;;  %v139_v2 = vpop.f32.mrb[7].mxu0  ;;  %v179_v3 = vpop.f32.mrb[7].mxu1 }
  0xe5   :  { %v358_v4 = vpack.c.bf16 %v136_v60, %v134_v56  ;;  %v366_v5 = vpack.c.bf16 %v176_v61, %v174_v57  ;;  %v140_v6 = vadd.f32 %v139_v2, %v496_v33  ;;  %v180_v7 = vadd.f32 %v179_v3, %v496_v33 }
  0xe7   :  { %300 = vst [vmem:[#allocation2 + $0x10] sm:$0xff] %v358_v4  ;;  %308 = vst [vmem:[#allocation2 + $0x50] sm:$0xff] %v366_v5  ;;  %v359_v8 = vpack.c.bf16 %v140_v6, %v138_v0  ;;  %v367_v9 = vpack.c.bf16 %v180_v7, %v178_v1 }
  0xe9   :  { %301 = vst [vmem:[#allocation2 + $0x18] sm:$0xff] %v359_v8  ;;  %309 = vst [vmem:[#allocation2 + $0x58] sm:$0xff] %v367_v9  ;;  %v143_v10 = vpop.f32.mrb[8].mxu0  ;;  %v183_v11 = vpop.f32.mrb[8].mxu1 }
  0xea   :  { %v144_v12 = vadd.f32 %v143_v10, %v494_v32  ;;  %v184_v13 = vadd.f32 %v183_v11, %v494_v32  ;;  %v145_v14 = vpop.f32.mrb[9].mxu0  ;;  %v185_v15 = vpop.f32.mrb[9].mxu1 }
  0xeb   :  { %v146_v16 = vadd.f32 %v145_v14, %v496_v33  ;;  %v186_v17 = vadd.f32 %v185_v15, %v496_v33  ;;  %v147_v18 = vpop.f32.mrb[10].mxu0  ;;  %v187_v19 = vpop.f32.mrb[10].mxu1 }
  0xec   :  { %v148_v20 = vadd.f32 %v147_v18, %v494_v32  ;;  %v188_v21 = vadd.f32 %v187_v19, %v494_v32  ;;  %v149_v22 = vpop.f32.mrb[11].mxu0  ;;  %v189_v23 = vpop.f32.mrb[11].mxu1 }
  0xed   :  { %v360_v24 = vpack.c.bf16 %v146_v16, %v144_v12  ;;  %v368_v25 = vpack.c.bf16 %v186_v17, %v184_v13  ;;  %v150_v26 = vadd.f32 %v149_v22, %v496_v33  ;;  %v190_v27 = vadd.f32 %v189_v23, %v496_v33 }
  0xef   :  { %302 = vst [vmem:[#allocation2 + $0x20] sm:$0xff] %v360_v24  ;;  %310 = vst [vmem:[#allocation2 + $0x60] sm:$0xff] %v368_v25  ;;  %v361_v28 = vpack.c.bf16 %v150_v26, %v148_v20  ;;  %v369_v29 = vpack.c.bf16 %v190_v27, %v188_v21 }
  0xf1   :  { %303 = vst [vmem:[#allocation2 + $0x28] sm:$0xff] %v361_v28  ;;  %311 = vst [vmem:[#allocation2 + $0x68] sm:$0xff] %v369_v29  ;;  %v153_v30 = vpop.f32.mrb[12].mxu0  ;;  %v193_v31 = vpop.f32.mrb[12].mxu1 }
  0xf2   :  { %v154_v34 = vadd.f32 %v153_v30, %v494_v32  ;;  %v194_v35 = vadd.f32 %v193_v31, %v494_v32  ;;  %v155_v36 = vpop.f32.mrb[13].mxu0  ;;  %v195_v37 = vpop.f32.mrb[13].mxu1 }
  0xf3   :  { %v156_v38 = vadd.f32 %v155_v36, %v496_v33  ;;  %v196_v39 = vadd.f32 %v195_v37, %v496_v33  ;;  %v157_v40 = vpop.f32.mrb[14].mxu0  ;;  %v197_v41 = vpop.f32.mrb[14].mxu1 }
  0xf4   :  { %v158_v42 = vadd.f32 %v157_v40, %v494_v32  ;;  %v198_v43 = vadd.f32 %v197_v41, %v494_v32  ;;  %v159_v44 = vpop.f32.mrb[15].mxu0  ;;  %v199_v45 = vpop.f32.mrb[15].mxu1 }
  0xf5   :  { %v362_v46 = vpack.c.bf16 %v156_v38, %v154_v34  ;;  %v370_v47 = vpack.c.bf16 %v196_v39, %v194_v35  ;;  %v160_v48 = vadd.f32 %v159_v44, %v496_v33  ;;  %v200_v49 = vadd.f32 %v199_v45, %v496_v33 }
  0xf7   :  { %304 = vst [vmem:[#allocation2 + $0x30] sm:$0xff] %v362_v46  ;;  %312 = vst [vmem:[#allocation2 + $0x70] sm:$0xff] %v370_v47  ;;  %v363_v50 = vpack.c.bf16 %v160_v48, %v158_v42  ;;  %v371_v51 = vpack.c.bf16 %v200_v49, %v198_v43 }
  0xf9   :  { %305 = vst [vmem:[#allocation2 + $0x38] sm:$0xff] %v363_v50  ;;  %313 = vst [vmem:[#allocation2 + $0x78] sm:$0xff] %v371_v51 }
  0xfa   :  { %392 = shalt.err (!%p389_p4)
}
  0xfb   :  { %s393_s24 = scalar_lea.hbm %s545_s3, 2048 }
  0xfc   :  { %p394_p5 = scmp.ne.s32.totalorder %s545_s3, %s393_s24  ;;  %p397_p6 = scmp.lt.u32.totalorder %s393_s24, %s545_s3 }
  0xfe   :  { %p399_p7 = pnand %p397_p6, %p394_p5 }
 0x100   :  { %402 = shalt.err (!%p399_p7)
}
 0x101   :  { %s407_s29 = smov 128   ;;  %s408_s30 = smov 8  }
 0x102   :  { %325 = dma.vmem_to_hbm [thread:$0]  %s320_s2, 2048, %s545_s3, [#allocation3], %s407_s29, %s407_s29, %s408_s30  }
 0x103   :  { %403 = dma.done.wait [#allocation3], 2048  }
 0x104   :  { %404 = vsyncadd [#allocation3], 4294965248 }
 0x105   :  { %329 = vsyncpa [#allocation3], 1 }

</bundles_post_ra>
